<compile_context>
chip_gen: v5e
topology: v5e:2x2
jax: 0.10.0
libtpu: 0.0.40
codegen_flags: <defaults>
</compile_context>

<pallas_src>
import functools

import jax
import jax.numpy as jnp
from jax import lax
from jax.experimental import pallas as pl
from jax.experimental.pallas import tpu as pltpu


# ---------------------------------------------------------------------------
# helpers
# ---------------------------------------------------------------------------

def _hardswish(x):
    return x * jnp.clip(x + 3.0, 0.0, 6.0) * (1.0 / 6.0)


def _row_tile(m):
    for t in (512, 256, 128, 64, 32, 16, 8):
        if m % t == 0:
            return t
    return m


_CP_1D = pltpu.CompilerParams(
    dimension_semantics=("parallel",),
    vmem_limit_bytes=48 * 1024 * 1024,
)


# ---------------------------------------------------------------------------
# 1. depthwise KxK conv (stride 1, padding k//2), channels-last
# ---------------------------------------------------------------------------

def _dwconv_kernel(x_ref, w_ref, b_ref, o_ref, xp_ref, *, H, W, C, KH, KW, PH, PW):
    # x_ref : (1, H, W, C)  unpadded input tile (one image)
    # w_ref : (KH*KW, C)    depthwise weights, tap-major
    # b_ref : (1, C)        per-channel bias (zeros when the conv has no bias)
    # o_ref : (1, H, W, C)
    # xp_ref: (H+2PH, W+2PW, C) VMEM scratch in the input dtype (zero-padded copy)

    # Zero the halo every step (scratch persists across grid steps / cores),
    # then copy the unpadded tile into the interior: padding handled entirely
    # in-kernel — no host-side jnp.pad pass over HBM.
    xp_ref[...] = jnp.zeros_like(xp_ref)
    xp_ref[PH:PH + H, PW:PW + W, :] = x_ref[0]

    # f32 accumulator initialised with the bias (saves a separate add pass).
    acc = jnp.broadcast_to(b_ref[...].astype(jnp.float32), (H, W, C))
    for kh in range(KH):
        for kw in range(KW):
            # Read each tap directly from the padded scratch ref; only the f32
            # accumulator and one tap are live at a time (no full f32 tile copy).
            tap = xp_ref[kh:kh + H, kw:kw + W, :].astype(jnp.float32)
            wv = w_ref[kh * KW + kw:kh * KW + kw + 1, :].astype(jnp.float32)  # (1, C)
            acc = acc + tap * wv
    o_ref[0] = acc.astype(o_ref.dtype)


def dwconv2d(x_nhwc, weight, bias, ksize):
    """Depthwise 2-D conv, stride 1, padding k//2 (PyTorch Conv2d(groups=C)).

    x_nhwc: (B, H, W, C) channels-last; weight: (C, 1, KH, KW); bias: (C,) or None.
    """
    B, H, W, C = x_nhwc.shape
    KH, KW = ksize
    assert KH % 2 == 1 and KW % 2 == 1, "only odd kernels (padding = k//2) supported"
    PH, PW = KH // 2, KW // 2

    w_tap = jnp.transpose(weight.reshape(C, KH, KW), (1, 2, 0)).reshape(KH * KW, C)
    b2 = jnp.zeros((1, C), jnp.float32) if bias is None else bias.reshape(1, C)

    # TODO(synk): for small C (seg_dim) a fully lane-dense layout would fold (W, C)
    # onto the lane axis (kw shift becomes a C-strided lane offset); kept C-on-lanes
    # here for lowering simplicity.
    kernel = functools.partial(
        _dwconv_kernel, H=H, W=W, C=C, KH=KH, KW=KW, PH=PH, PW=PW)
    return pl.pallas_call(
        kernel,
        out_shape=jax.ShapeDtypeStruct((B, H, W, C), x_nhwc.dtype),
        grid_spec=pltpu.PrefetchScalarGridSpec(
            num_scalar_prefetch=0,
            grid=(B,),
            in_specs=[
                pl.BlockSpec((1, H, W, C), lambda b: (b, 0, 0, 0)),
                pl.BlockSpec((KH * KW, C), lambda b: (0, 0)),
                pl.BlockSpec((1, C), lambda b: (0, 0)),
            ],
            out_specs=pl.BlockSpec((1, H, W, C), lambda b: (b, 0, 0, 0)),
            scratch_shapes=[pltpu.VMEM((H + 2 * PH, W + 2 * PW, C), x_nhwc.dtype)],
        ),
        compiler_params=_CP_1D,
    )(x_nhwc, w_tap, b2)


# ---------------------------------------------------------------------------
# 2. matmul + per-output-channel affine (+ optional Hardswish)
# ---------------------------------------------------------------------------

def _matmul_affine_kernel(x_ref, w_ref, s_ref, t_ref, o_ref, *, act):
    y = jnp.dot(x_ref[...].astype(jnp.float32), w_ref[...].astype(jnp.float32),
                preferred_element_type=jnp.float32)
    y = y * s_ref[...].astype(jnp.float32) + t_ref[...].astype(jnp.float32)
    if act == "hardswish":
        y = _hardswish(y)
    o_ref[...] = y.astype(o_ref.dtype)


def matmul_affine(x, w, scale, shift, act=None):
    """act((x @ w) * scale + shift); x: (M, K), w: (K, N), scale/shift: (N,)."""
    M, K = x.shape
    _, Nc = w.shape
    tm = _row_tile(M)
    return pl.pallas_call(
        functools.partial(_matmul_affine_kernel, act=act),
        out_shape=jax.ShapeDtypeStruct((M, Nc), x.dtype),
        grid_spec=pltpu.PrefetchScalarGridSpec(
            num_scalar_prefetch=0,
            grid=(M // tm,),
            in_specs=[
                pl.BlockSpec((tm, K), lambda i: (i, 0)),
                pl.BlockSpec((K, Nc), lambda i: (0, 0)),
                pl.BlockSpec((1, Nc), lambda i: (0, 0)),
                pl.BlockSpec((1, Nc), lambda i: (0, 0)),
            ],
            out_specs=pl.BlockSpec((tm, Nc), lambda i: (i, 0)),
        ),
        compiler_params=_CP_1D,
    )(x, w, scale.reshape(1, Nc), shift.reshape(1, Nc))


# ---------------------------------------------------------------------------
# 3. per-channel affine + Hardswish (BatchNorm-only branch)
# ---------------------------------------------------------------------------

def _affine_act_kernel(x_ref, s_ref, t_ref, o_ref, *, act):
    y = (x_ref[...].astype(jnp.float32) * s_ref[...].astype(jnp.float32)
         + t_ref[...].astype(jnp.float32))
    if act == "hardswish":
        y = _hardswish(y)
    o_ref[...] = y.astype(o_ref.dtype)


def affine_act(x, scale, shift, act=None):
    M, C = x.shape
    tm = _row_tile(M)
    return pl.pallas_call(
        functools.partial(_affine_act_kernel, act=act),
        out_shape=jax.ShapeDtypeStruct((M, C), x.dtype),
        grid_spec=pltpu.PrefetchScalarGridSpec(
            num_scalar_prefetch=0,
            grid=(M // tm,),
            in_specs=[
                pl.BlockSpec((tm, C), lambda i: (i, 0)),
                pl.BlockSpec((1, C), lambda i: (0, 0)),
                pl.BlockSpec((1, C), lambda i: (0, 0)),
            ],
            out_specs=pl.BlockSpec((tm, C), lambda i: (i, 0)),
        ),
        compiler_params=_CP_1D,
    )(x, scale.reshape(1, C), shift.reshape(1, C))


# ---------------------------------------------------------------------------
# 4. LayerNorm over channels + Hardswish (Agg0 tail)
# ---------------------------------------------------------------------------

def _layernorm_act_kernel(x_ref, g_ref, b_ref, o_ref, *, eps, act):
    xv = x_ref[...].astype(jnp.float32)
    mu = jnp.mean(xv, axis=-1, keepdims=True)
    xc = xv - mu
    var = jnp.mean(xc * xc, axis=-1, keepdims=True)
    y = xc * lax.rsqrt(var + eps)
    y = y * g_ref[...].astype(jnp.float32) + b_ref[...].astype(jnp.float32)
    if act == "hardswish":
        y = _hardswish(y)
    o_ref[...] = y.astype(o_ref.dtype)


def layernorm_act(x, gamma, beta, act=None, eps=1e-5):
    M, C = x.shape
    tm = _row_tile(M)
    return pl.pallas_call(
        functools.partial(_layernorm_act_kernel, eps=eps, act=act),
        out_shape=jax.ShapeDtypeStruct((M, C), x.dtype),
        grid_spec=pltpu.PrefetchScalarGridSpec(
            num_scalar_prefetch=0,
            grid=(M // tm,),
            in_specs=[
                pl.BlockSpec((tm, C), lambda i: (i, 0)),
                pl.BlockSpec((1, C), lambda i: (0, 0)),
                pl.BlockSpec((1, C), lambda i: (0, 0)),
            ],
            out_specs=pl.BlockSpec((tm, C), lambda i: (i, 0)),
        ),
        compiler_params=_CP_1D,
    )(x, gamma.reshape(1, C), beta.reshape(1, C))


# ---------------------------------------------------------------------------
# 5. efficient ("linear") attention fused with the conv-rel-pos-enc term
#    out = scale * (q @ (softmax_N(k)^T @ v)) + q * conv_v    per (batch, head)
# ---------------------------------------------------------------------------

def _eff_att_kernel(q_ref, k_ref, v_ref, cv_ref, o_ref, *, scale):
    q = q_ref[0, 0].astype(jnp.float32)        # (N, D)
    k = k_ref[0, 0].astype(jnp.float32)
    v = v_ref[0, 0].astype(jnp.float32)
    cv = cv_ref[0, 0].astype(jnp.float32)

    k = k - jnp.max(k, axis=0, keepdims=True)  # softmax over the token axis (N)
    ek = jnp.exp(k)
    k_sm = ek / jnp.sum(ek, axis=0, keepdims=True)

    ktv = jnp.dot(k_sm.T, v, preferred_element_type=jnp.float32)   # (D, D)
    eff = jnp.dot(q, ktv, preferred_element_type=jnp.float32)      # (N, D)
    o_ref[0, 0] = (scale * eff + q * cv).astype(o_ref.dtype)


def efficient_attention(q, k, v, conv_v, scale):
    B, L, N, D = q.shape
    blk = pl.BlockSpec((1, 1, N, D), lambda b, h: (b, h, 0, 0))
    return pl.pallas_call(
        functools.partial(_eff_att_kernel, scale=scale),
        out_shape=jax.ShapeDtypeStruct((B, L, N, D), q.dtype),
        grid_spec=pltpu.PrefetchScalarGridSpec(
            num_scalar_prefetch=0,
            grid=(B, L),
            in_specs=[blk, blk, blk, blk],
            out_specs=blk,
        ),
        compiler_params=pltpu.CompilerParams(
            dimension_semantics=("parallel", "parallel"),
            vmem_limit_bytes=48 * 1024 * 1024,
        ),
    )(q, k, v, conv_v)


# ---------------------------------------------------------------------------
# EfficientAtt forward (Pallas path)
# ---------------------------------------------------------------------------

def _fold_bn(bn, eps=1e-5):
    gamma, beta, mean, var = bn
    s = gamma / jnp.sqrt(var + eps)
    return s, beta - mean * s


def efficient_att_forward(params, x, size, num_heads):
    B, N, C = x.shape
    H, W = size
    assert N == H * W and C % 5 == 0
    seg_dim = C // 5
    C4 = C // 5 * 4
    L = num_heads
    assert C4 % L == 0
    Dh = C4 // L
    scale = float((C // num_heads) ** -0.5)

    # --- qkv projection ------------------------------------------------------
    qkv = matmul_affine(x.reshape(B * N, C), params["qkv_w"].T,
                        jnp.ones((3 * C,), jnp.float32), params["qkv_b"], act=None)
    qkv = qkv.reshape(B, N, 3, C).transpose(2, 0, 1, 3).reshape(3 * B, N, C)
    xs = qkv.reshape(3 * B, H, W, C)                      # channels-last spatial
    s = [xs[..., i * seg_dim:(i + 1) * seg_dim] for i in range(5)]

    # --- Aggregator: local branch (Agg0) --------------------------------------
    xl = s[4].reshape(3, B, H, W, seg_dim).transpose(1, 2, 3, 0, 4)
    xl = xl.reshape(B, H, W, 3 * seg_dim)
    xl = dwconv2d(xl, params["agg0_dw"], None, (3, 3))
    xl = matmul_affine(xl.reshape(B * N, 3 * seg_dim),
                       params["agg0_pw"][:, :, 0, 0].T,
                       jnp.ones((seg_dim,), jnp.float32),
                       jnp.zeros((seg_dim,), jnp.float32), act=None)
    x_agg0 = layernorm_act(xl, params["agg0_ln_g"], params["agg0_ln_b"],
                           act="hardswish").reshape(B, N, seg_dim)

    # --- Aggregator: global branches -------------------------------------------
    # TODO(synk): BatchNorm2d is applied in eval mode (running stats folded to
    # scale/shift); training-mode batch statistics are not implemented.
    sc0, sh0 = _fold_bn(params["bn0"])
    x0 = affine_act(s[0].reshape(3 * B * N, seg_dim), sc0, sh0, act="hardswish")

    def branch(s_img, dw_w, pw_w, bn, ksz):
        t = dwconv2d(s_img, dw_w, None, (ksz, ksz))
        sc, sh = _fold_bn(bn)
        return matmul_affine(t.reshape(3 * B * N, seg_dim),
                             pw_w[:, :, 0, 0].T, sc, sh, act="hardswish")

    x1 = branch(s[1], params["agg1_dw"], params["agg1_pw"], params["bn1"], 3)
    x2 = branch(s[2], params["agg2_dw"], params["agg2_pw"], params["bn2"], 5)
    x3 = branch(s[3], params["agg3_dw"], params["agg3_pw"], params["bn3"], 7)

    x_cat = jnp.concatenate([x0, x1, x2, x3], axis=-1)     # (3B*N, C4)
    qkv_h = x_cat.reshape(3, B, N, L, Dh).transpose(0, 1, 3, 2, 4)
    q, k, v = qkv_h[0], qkv_h[1], qkv_h[2]                 # (B, L, N, Dh)

    # --- ConvRelPosEnc: depthwise convs on v -----------------------------------
    v_img = v.reshape(B, L, H, W, Dh).transpose(0, 2, 3, 1, 4).reshape(B, H, W, L * Dh)
    splits, windows = (2 * Dh, 3 * Dh, 3 * Dh), (3, 5, 7)
    outs, off = [], 0
    for i, (cs, kk) in enumerate(zip(splits, windows)):
        outs.append(dwconv2d(v_img[..., off:off + cs],
                             params["crpe_dw"][i], params["crpe_b"][i], (kk, kk)))
        off += cs
    conv_v = jnp.concatenate(outs, axis=-1).reshape(B, H, W, L, Dh)
    conv_v = conv_v.transpose(0, 3, 1, 2, 4).reshape(B, L, N, Dh)

    # --- fused linear attention + crpe -----------------------------------------
    att = efficient_attention(q, k, v, conv_v, scale)      # (B, L, N, Dh)
    x_att = att.transpose(0, 2, 1, 3).reshape(B, N, C4)

    # --- output projection ------------------------------------------------------
    x_out = jnp.concatenate([x_att, x_agg0], axis=-1).reshape(B * N, C)
    out = matmul_affine(x_out, params["proj_w"].T, jnp.ones((C,), jnp.float32),
                        params["proj_b"], act=None)
    # TODO(synk): proj_drop (nn.Dropout) is inference-mode identity here.
    return out.reshape(B, N, C)


# ---------------------------------------------------------------------------
# pure-JAX reference mirroring the PyTorch module (NCHW), for verification
# ---------------------------------------------------------------------------

def _bn_eval_ref(x, bn, eps=1e-5):
    g, b, m, v = bn
    return ((x - m[None, :, None, None]) / jnp.sqrt(v + eps)[None, :, None, None]
            * g[None, :, None, None] + b[None, :, None, None])


def _dwconv_ref(x, w, b, pad):
    c = x.shape[1]
    y = lax.conv_general_dilated(
        x, w, (1, 1), [(pad, pad), (pad, pad)], feature_group_count=c,
        dimension_numbers=("NCHW", "OIHW", "NCHW"), precision=lax.Precision.HIGHEST)
    if b is not None:
        y = y + b[None, :, None, None]
    return y


def _pwconv_ref(x, w):
    return lax.conv_general_dilated(
        x, w, (1, 1), [(0, 0), (0, 0)],
        dimension_numbers=("NCHW", "OIHW", "NCHW"), precision=lax.Precision.HIGHEST)


def efficient_att_reference(params, x, size, num_heads):
    B, N, C = x.shape
    H, W = size
    seg_dim = C // 5
    C4 = C // 5 * 4
    L = num_heads
    Dh = C4 // L
    scale = (C // num_heads) ** -0.5
    hp = lax.Precision.HIGHEST

    qkv = jnp.einsum("bnc,dc->bnd", x, params["qkv_w"], precision=hp) + params["qkv_b"]
    qkv = qkv.reshape(B, N, 3, C).transpose(2, 0, 1, 3).reshape(3 * B, N, C)

    xa = jnp.transpose(qkv, (0, 2, 1)).reshape(3 * B, C, H, W)
    xs = [xa[:, i * seg_dim:(i + 1) * seg_dim] for i in range(5)]

    # Agg0 (local branch)
    xl = xs[4].reshape(3, B, seg_dim, H, W).transpose(1, 0, 2, 3, 4)
    xl = xl.reshape(B, 3 * seg_dim, H, W)
    t = _pwconv_ref(_dwconv_ref(xl, params["agg0_dw"], None, 1), params["agg0_pw"])
    t = t.reshape(B, seg_dim, N).transpose(0, 2, 1)
    mu = t.mean(-1, keepdims=True)
    var = ((t - mu) ** 2).mean(-1, keepdims=True)
    t = (t - mu) / jnp.sqrt(var + 1e-5) * params["agg0_ln_g"] + params["agg0_ln_b"]
    x_agg0 = _hardswish(t)

    x0 = _hardswish(_bn_eval_ref(xs[0], params["bn0"]))

    def br(xi, dw, pw, bn, pad):
        y = _pwconv_ref(_dwconv_ref(xi, dw, None, pad), pw)
        return _hardswish(_bn_eval_ref(y, bn))

    x1 = br(xs[1], params["agg1_dw"], params["agg1_pw"], params["bn1"], 1)
    x2 = br(xs[2], params["agg2_dw"], params["agg2_pw"], params["bn2"], 2)
    x3 = br(xs[3], params["agg3_dw"], params["agg3_pw"], params["bn3"], 3)

    xc = jnp.concatenate([x0, x1, x2, x3], axis=1)               # (3B, C4, H, W)
    qkv_h = xc.reshape(3, B, L, Dh, H * W).transpose(0, 1, 2, 4, 3)
    q, k, v = qkv_h[0], qkv_h[1], qkv_h[2]

    k_sm = jax.nn.softmax(k, axis=2)
    ktv = jnp.einsum("bhnk,bhnv->bhkv", k_sm, v, precision=hp)
    eff = jnp.einsum("bhnk,bhkv->bhnv", q, ktv, precision=hp)

    v_img = v.reshape(B, L, H, W, Dh).transpose(0, 1, 4, 2, 3).reshape(B, L * Dh, H, W)
    splits, pads = (2 * Dh, 3 * Dh, 3 * Dh), (1, 2, 3)
    outs, off = [], 0
    for i, (cs, pd) in enumerate(zip(splits, pads)):
        outs.append(_dwconv_ref(v_img[:, off:off + cs],
                                params["crpe_dw"][i], params["crpe_b"][i], pd))
        off += cs
    cv = jnp.concatenate(outs, axis=1).reshape(B, L, Dh, H, W)
    cv = cv.transpose(0, 1, 3, 4, 2).reshape(B, L, N, Dh)
    crpe = q * cv

    y = scale * eff + crpe
    y = y.transpose(0, 2, 1, 3).reshape(B, N, C4)
    y = jnp.concatenate([y, x_agg0], axis=-1)
    return jnp.einsum("bnc,dc->bnd", y, params["proj_w"], precision=hp) + params["proj_b"]


# ---------------------------------------------------------------------------
# main
# ---------------------------------------------------------------------------

def _make_params(key, dim, num_heads):
    seg_dim = dim // 5
    Dh = (dim // 5 * 4) // num_heads
    kit = iter(jax.random.split(key, 64))

    def nrm(shape, sc=0.2):
        return jax.random.normal(next(kit), shape, jnp.float32) * sc

    def bn(c):
        return (1.0 + nrm((c,), 0.1), nrm((c,), 0.1), nrm((c,), 0.1),
                jax.random.uniform(next(kit), (c,), jnp.float32, 0.5, 1.5))

    return {
        "qkv_w": nrm((3 * dim, dim)),
        "qkv_b": nrm((3 * dim,)),
        "proj_w": nrm((dim, dim)),
        "proj_b": nrm((dim,)),
        "agg0_dw": nrm((3 * seg_dim, 1, 3, 3)),
        "agg0_pw": nrm((seg_dim, 3 * seg_dim, 1, 1)),
        "agg0_ln_g": 1.0 + nrm((seg_dim,), 0.1),
        "agg0_ln_b": nrm((seg_dim,), 0.1),
        "bn0": bn(seg_dim),
        "agg1_dw": nrm((seg_dim, 1, 3, 3)),
        "agg1_pw": nrm((seg_dim, seg_dim, 1, 1)),
        "bn1": bn(seg_dim),
        "agg2_dw": nrm((seg_dim, 1, 5, 5)),
        "agg2_pw": nrm((seg_dim, seg_dim, 1, 1)),
        "bn2": bn(seg_dim),
        "agg3_dw": nrm((seg_dim, 1, 7, 7)),
        "agg3_pw": nrm((seg_dim, seg_dim, 1, 1)),
        "bn3": bn(seg_dim),
        "crpe_dw": [nrm((2 * Dh, 1, 3, 3)), nrm((3 * Dh, 1, 5, 5)), nrm((3 * Dh, 1, 7, 7))],
        "crpe_b": [nrm((2 * Dh,)), nrm((3 * Dh,)), nrm((3 * Dh,))],
    }


if __name__ == "__main__":
    B, H, W = 2, 8, 8
    dim, num_heads = 40, 8          # seg_dim=8, t_dim=32, head_dim=4 (window {3:2,5:3,7:3})
    N = H * W

    key = jax.random.PRNGKey(0)
    kp, kx = jax.random.split(key)
    params = _make_params(kp, dim, num_heads)
    x = jax.random.normal(kx, (B, N, dim), jnp.float32)

    out = efficient_att_forward(params, x, (H, W), num_heads)
    out = jax.block_until_ready(out)
    assert out.shape == (B, N, dim)

    ref = efficient_att_reference(params, x, (H, W), num_heads)
    err = float(jnp.max(jnp.abs(out - ref)))
    assert jnp.allclose(out, ref, atol=5e-3, rtol=5e-3), f"max |diff| = {err}"

    print("KERNEL_OK")
</pallas_src>

<mosaic_0001>
module attributes {stable_mosaic.version = 11 : i64} {
  func.func @_matmul_affine_kernel(%arg0: i32, %arg1: memref<128x40xf32, #tpu.memory_space<vmem>>, %arg2: memref<40x120xf32, #tpu.memory_space<vmem>>, %arg3: memref<1x120xf32, #tpu.memory_space<vmem>>, %arg4: memref<1x120xf32, #tpu.memory_space<vmem>>, %arg5: memref<128x120xf32, #tpu.memory_space<vmem>>) attributes {dimension_semantics = [#tpu.dimension_semantics<parallel>], iteration_bounds = array<i64: 1>, scalar_prefetch = 0 : i64, scratch_operands = 0 : i64, tpu.core_type = #tpu.core_type<tc>, window_params = [{transform_indices = @transform_0, window_bounds = array<i64: 128, 40>}, {pipeline_mode = #tpu.pipeline_mode<synchronous>, transform_indices = @transform_1, window_bounds = array<i64: 40, 120>}, {pipeline_mode = #tpu.pipeline_mode<synchronous>, transform_indices = @transform_2, window_bounds = array<i64: 1, 120>}, {pipeline_mode = #tpu.pipeline_mode<synchronous>, transform_indices = @transform_3, window_bounds = array<i64: 1, 120>}, {transform_indices = @transform_4, window_bounds = array<i64: 128, 120>}]} {
    %c0 = arith.constant 0 : index
    %c0_0 = arith.constant 0 : index
    %0 = vector.load %arg1[%c0, %c0_0] : memref<128x40xf32, #tpu.memory_space<vmem>>, vector<128x40xf32>
    %c0_1 = arith.constant 0 : index
    %c0_2 = arith.constant 0 : index
    %1 = vector.load %arg2[%c0_1, %c0_2] : memref<40x120xf32, #tpu.memory_space<vmem>>, vector<40x120xf32>
    %cst = arith.constant dense<0.000000e+00> : vector<128x120xf32>
    %2 = tpu.matmul %0, %1, %cst {dimension_numbers = #tpu.dot_dimension_numbers<[1], [0], [0], [1], [0, 0, 1, 1], [], []>} : vector<128x40xf32>, vector<40x120xf32>, vector<128x120xf32> -> vector<128x120xf32>
    %c0_3 = arith.constant 0 : index
    %c0_4 = arith.constant 0 : index
    %3 = vector.load %arg3[%c0_3, %c0_4] : memref<1x120xf32, #tpu.memory_space<vmem>>, vector<1x120xf32>
    %4 = vector.broadcast %3 : vector<1x120xf32> to vector<128x120xf32>
    %5 = arith.mulf %2, %4 : vector<128x120xf32>
    %c0_5 = arith.constant 0 : index
    %c0_6 = arith.constant 0 : index
    %6 = vector.load %arg4[%c0_5, %c0_6] : memref<1x120xf32, #tpu.memory_space<vmem>>, vector<1x120xf32>
    %7 = vector.broadcast %6 : vector<1x120xf32> to vector<128x120xf32>
    %8 = arith.addf %5, %7 : vector<128x120xf32>
    %c0_7 = arith.constant 0 : index
    %c0_8 = arith.constant 0 : index
    %9 = vector.load %arg5[%c0_7, %c0_8] : memref<128x120xf32, #tpu.memory_space<vmem>>, vector<128x120xf32>
    tpu.vector_store %arg5[%c0_7, %c0_8], %8 {strides = array<i32>} : memref<128x120xf32, #tpu.memory_space<vmem>>, vector<128x120xf32>,
    return
  }
  func.func @transform_0(%arg0: i32) -> (i32, i32) {
    %c0_i32 = arith.constant 0 : i32
    %c0_i32_0 = arith.constant 0 : i32
    return %arg0, %c0_i32 : i32, i32
  }
  func.func @transform_1(%arg0: i32) -> (i32, i32) {
    %c0_i32 = arith.constant 0 : i32
    %c0_i32_0 = arith.constant 0 : i32
    %c0_i32_1 = arith.constant 0 : i32
    return %c0_i32, %c0_i32_0 : i32, i32
  }
  func.func @transform_2(%arg0: i32) -> (i32, i32) {
    %c0_i32 = arith.constant 0 : i32
    %c0_i32_0 = arith.constant 0 : i32
    %c0_i32_1 = arith.constant 0 : i32
    return %c0_i32, %c0_i32_0 : i32, i32
  }
  func.func @transform_3(%arg0: i32) -> (i32, i32) {
    %c0_i32 = arith.constant 0 : i32
    %c0_i32_0 = arith.constant 0 : i32
    %c0_i32_1 = arith.constant 0 : i32
    return %c0_i32, %c0_i32_0 : i32, i32
  }
  func.func @transform_4(%arg0: i32) -> (i32, i32) {
    %c0_i32 = arith.constant 0 : i32
    %c0_i32_0 = arith.constant 0 : i32
    return %arg0, %c0_i32 : i32, i32
  }
}

</mosaic_0001>

<bundles_post_ra>
// kernel: tpu_custom_call.1
= control target key start
LH: loop header
LB: loop body
LE: loop exit
PB: predicated region body
PF: predicated region fallthrough
CT: control target
= control target key end

     0   :  { %vm38_vm0 = vcmask 326656   ;;  %vm192_vm1 = vcmask 982016   ;;  %s438_s1 = inlined_call_operand.vmem [shape: f32[40,120], index: 1, kind: input, shape index: {}]   ;;  %s439_s0 = inlined_call_operand.vmem [shape: f32[128,40], index: 0, kind: input, shape index: {}]   ;;  %s440_s2 = inlined_call_operand.vmem [shape: f32[1,120], index: 2, kind: input, shape index: {}]   ;;  %s441_s3 = inlined_call_operand.vmem [shape: f32[1,120], index: 3, kind: input, shape index: {}]   ;;  %s442_s4 = inlined_call_operand.vmem [shape: f32[128,120], index: 4, kind: output, shape index: {}]  }
   0x1   :  { %v37_v0 = vld [vmem:[%s438_s1 + $0x20] sm:$0xff]  ;;  %v36_v1 = vld [vmem:[%s438_s1 + $0x18] sm:$0xff]  ;;  %v35_v2 = vld [vmem:[%s438_s1 + $0x10] sm:$0xff] }
   0x2   :  { %230 = vmatpush.msra.mxu2 %v37_v0  ;;  %231 = vmatpush.msra.mxu3 %v37_v0  ;;  %v34_v3 = vld [vmem:[%s438_s1 + $0x8] sm:$0xff]  ;;  %v33_v4 = vld [vmem:[%s438_s1] sm:$0xff]  ;;  %v27_v13 = vld [vmem:[%s439_s0 + $0x50] sm:$0xff] }
   0x3   :  { %98 = vmatpush.msra.mxu0 %v37_v0  ;;  %229 = vmatpush.msra.mxu1 %v37_v0  ;;  %v25_v5 = vld [vmem:[%s439_s0 + $0x40] sm:$0xff]  ;;  %v26_v9 = vld [vmem:[%s439_s0 + $0x48] sm:$0xff]  ;;  %v31_v14 = vld [vmem:[%s439_s0 + $0x70] sm:$0xff] }
   0x4   :  { %233 = vmatpush.msra.mxu2 %v36_v1  ;;  %234 = vmatpush.msra.mxu3 %v36_v1  ;;  %v29_v6 = vld [vmem:[%s439_s0 + $0x60] sm:$0xff]  ;;  %v30_v10 = vld [vmem:[%s439_s0 + $0x68] sm:$0xff]  ;;  %v19_v15 = vld [vmem:[%s439_s0 + $0x10] sm:$0xff] }
   0x5   :  { %99 = vmatpush.msra.mxu0 %v36_v1  ;;  %232 = vmatpush.msra.mxu1 %v36_v1  ;;  %v17_v7 = vld [vmem:[%s439_s0] sm:$0xff]  ;;  %v18_v11 = vld [vmem:[%s439_s0 + $0x8] sm:$0xff]  ;;  %v23_v16 = vld [vmem:[%s439_s0 + $0x30] sm:$0xff] }
   0x6   :  { %236 = vmatpush.msra.mxu2 %v35_v2  ;;  %237 = vmatpush.msra.mxu3 %v35_v2  ;;  %v21_v8 = vld [vmem:[%s439_s0 + $0x20] sm:$0xff]  ;;  %v22_v12 = vld [vmem:[%s439_s0 + $0x28] sm:$0xff]  ;;  %v28_v17 = vld [vmem:[%s439_s0 + $0x58] sm:$0xff] }
   0x7   :  { %100 = vmatpush.msra.mxu0 %v35_v2  ;;  %235 = vmatpush.msra.mxu1 %v35_v2  ;;  %v32_v18 = vld [vmem:[%s439_s0 + $0x78] sm:$0xff]  ;;  %v244_v21 = vld [vmem:[%s440_s2] ss:$0 sm:$0xff] }
   0x8   :  { %239 = vmatpush.msra.mxu2 %v34_v3  ;;  %240 = vmatpush.msra.mxu3 %v34_v3  ;;  %v20_v19 = vld [vmem:[%s439_s0 + $0x18] sm:$0xff]  ;;  %v356_v22 = vld [vmem:[%s441_s3] ss:$0 sm:$0xff] }
   0x9   :  { %101 = vmatpush.msra.mxu0 %v34_v3  ;;  %238 = vmatpush.msra.mxu1 %v34_v3  ;;  %v24_v20 = vld [vmem:[%s439_s0 + $0x38] sm:$0xff] }
   0xa   :  { %242 = vmatpush.msra.mxu2 %v33_v4  ;;  %243 = vmatpush.msra.mxu3 %v33_v4 }
   0xb   :  { %221 = vmatmul.msk.f32.vlgmr.msra.gmra.mxu2 %vm38_vm0, %v25_v5  ;;  %225 = vmatmul.msk.f32.vlgmr.msra.gmra.mxu3 %vm38_vm0, %v29_v6 }
   0xc   :  { %102 = vmatpush.msra.mxu0 %v33_v4  ;;  %241 = vmatpush.msra.mxu1 %v33_v4 }
   0xd   :  { %213 = vmatmul.msk.f32.vlgmr.msra.gmra.mxu0 %vm38_vm0, %v17_v7  ;;  %217 = vmatmul.msk.f32.vlgmr.msra.gmra.mxu1 %vm38_vm0, %v21_v8 }
  0x13   :  { %222 = vmatmul.msk.f32.gmra.mxu2 %vm38_vm0, %v26_v9  ;;  %226 = vmatmul.msk.f32.gmra.mxu3 %vm38_vm0, %v30_v10 }
  0x15   :  { %214 = vmatmul.msk.f32.gmra.mxu0 %vm38_vm0, %v18_v11  ;;  %218 = vmatmul.msk.f32.gmra.mxu1 %vm38_vm0, %v22_v12 }
  0x1b   :  { %223 = vmatmul.msk.f32.gmra.mxu2 %vm38_vm0, %v27_v13  ;;  %227 = vmatmul.msk.f32.gmra.mxu3 %vm38_vm0, %v31_v14 }
  0x1d   :  { %215 = vmatmul.msk.f32.gmra.mxu0 %vm38_vm0, %v19_v15  ;;  %219 = vmatmul.msk.f32.gmra.mxu1 %vm38_vm0, %v23_v16 }
  0x23   :  { %224 = vmatmul.msk.f32.gmra.mxu2 %vm38_vm0, %v28_v17  ;;  %228 = vmatmul.msk.f32.gmra.mxu3 %vm38_vm0, %v32_v18 }
  0x25   :  { %216 = vmatmul.msk.f32.gmra.mxu0 %vm38_vm0, %v20_v19  ;;  %220 = vmatmul.msk.f32.gmra.mxu1 %vm38_vm0, %v24_v20 }
  0x8a   :  { %v104_v23 = vpop.f32.mrf.mxu0  ;;  %v116_v24 = vpop.f32.mrf.mxu1 }
  0x8b   :  { %v156_v25 = vmul.f32 %v244_v21, %v104_v23  ;;  %v160_v26 = vmul.f32 %v244_v21, %v116_v24 }
  0x8d   :  { %v176_v27 = vadd.f32 %v356_v22, %v156_v25  ;;  %v180_v28 = vadd.f32 %v356_v22, %v160_v26 }
  0x8e   :  { %v128_v29 = vpop.f32.mrf.mxu2  ;;  %v140_v30 = vpop.f32.mrf.mxu3 }
  0x8f   :  { %193 = vst.msk [vmem:[%s442_s4] sm:$0xff] %vm192_vm1, %v176_v27  ;;  %v164_v31 = vmul.f32 %v244_v21, %v128_v29  ;;  %v168_v32 = vmul.f32 %v244_v21, %v140_v30 }
  0x90   :  { %197 = vst.msk [vmem:[%s442_s4 + $0x20] sm:$0xff] %vm192_vm1, %v180_v28 }
  0x91   :  { %v184_v33 = vadd.f32 %v356_v22, %v164_v31  ;;  %v188_v34 = vadd.f32 %v356_v22, %v168_v32 }
  0x92   :  { %v107_v35 = vpop.f32.mrf.mxu0  ;;  %v119_v36 = vpop.f32.mrf.mxu1 }
  0x93   :  { %201 = vst.msk [vmem:[%s442_s4 + $0x40] sm:$0xff] %vm192_vm1, %v184_v33  ;;  %v157_v37 = vmul.f32 %v244_v21, %v107_v35  ;;  %v161_v38 = vmul.f32 %v244_v21, %v119_v36 }
  0x94   :  { %205 = vst.msk [vmem:[%s442_s4 + $0x60] sm:$0xff] %vm192_vm1, %v188_v34 }
  0x95   :  { %v177_v39 = vadd.f32 %v356_v22, %v157_v37  ;;  %v181_v40 = vadd.f32 %v356_v22, %v161_v38 }
  0x96   :  { %v131_v41 = vpop.f32.mrf.mxu2  ;;  %v143_v42 = vpop.f32.mrf.mxu3 }
  0x97   :  { %194 = vst.msk [vmem:[%s442_s4 + $0x8] sm:$0xff] %vm192_vm1, %v177_v39  ;;  %v165_v43 = vmul.f32 %v244_v21, %v131_v41  ;;  %v169_v44 = vmul.f32 %v244_v21, %v143_v42 }
  0x98   :  { %198 = vst.msk [vmem:[%s442_s4 + $0x28] sm:$0xff] %vm192_vm1, %v181_v40 }
  0x99   :  { %v185_v45 = vadd.f32 %v356_v22, %v165_v43  ;;  %v189_v46 = vadd.f32 %v356_v22, %v169_v44 }
  0x9a   :  { %v110_v47 = vpop.f32.mrf.mxu0  ;;  %v122_v48 = vpop.f32.mrf.mxu1 }
  0x9b   :  { %202 = vst.msk [vmem:[%s442_s4 + $0x48] sm:$0xff] %vm192_vm1, %v185_v45  ;;  %v158_v49 = vmul.f32 %v244_v21, %v110_v47  ;;  %v162_v50 = vmul.f32 %v244_v21, %v122_v48 }
  0x9c   :  { %206 = vst.msk [vmem:[%s442_s4 + $0x68] sm:$0xff] %vm192_vm1, %v189_v46 }
  0x9d   :  { %v178_v51 = vadd.f32 %v356_v22, %v158_v49  ;;  %v182_v52 = vadd.f32 %v356_v22, %v162_v50 }
  0x9e   :  { %v134_v53 = vpop.f32.mrf.mxu2  ;;  %v146_v54 = vpop.f32.mrf.mxu3 }
  0x9f   :  { %195 = vst.msk [vmem:[%s442_s4 + $0x10] sm:$0xff] %vm192_vm1, %v178_v51  ;;  %v166_v55 = vmul.f32 %v244_v21, %v134_v53  ;;  %v170_v56 = vmul.f32 %v244_v21, %v146_v54 }
  0xa0   :  { %199 = vst.msk [vmem:[%s442_s4 + $0x30] sm:$0xff] %vm192_vm1, %v182_v52 }
  0xa1   :  { %v186_v57 = vadd.f32 %v356_v22, %v166_v55  ;;  %v190_v58 = vadd.f32 %v356_v22, %v170_v56 }
  0xa2   :  { %v113_v59 = vpop.f32.mrf.mxu0  ;;  %v125_v60 = vpop.f32.mrf.mxu1 }
  0xa3   :  { %203 = vst.msk [vmem:[%s442_s4 + $0x50] sm:$0xff] %vm192_vm1, %v186_v57  ;;  %v159_v61 = vmul.f32 %v244_v21, %v113_v59  ;;  %v163_v62 = vmul.f32 %v244_v21, %v125_v60 }
  0xa4   :  { %207 = vst.msk [vmem:[%s442_s4 + $0x70] sm:$0xff] %vm192_vm1, %v190_v58 }
  0xa5   :  { %v179_v63 = vadd.f32 %v356_v22, %v159_v61  ;;  %v183_v0 = vadd.f32 %v356_v22, %v163_v62 }
  0xa6   :  { %v137_v1 = vpop.f32.mrf.mxu2  ;;  %v149_v2 = vpop.f32.mrf.mxu3 }
  0xa7   :  { %196 = vst.msk [vmem:[%s442_s4 + $0x18] sm:$0xff] %vm192_vm1, %v179_v63  ;;  %v167_v3 = vmul.f32 %v244_v21, %v137_v1  ;;  %v171_v4 = vmul.f32 %v244_v21, %v149_v2 }
  0xa8   :  { %200 = vst.msk [vmem:[%s442_s4 + $0x38] sm:$0xff] %vm192_vm1, %v183_v0 }
  0xa9   :  { %v187_v5 = vadd.f32 %v356_v22, %v167_v3  ;;  %v191_v6 = vadd.f32 %v356_v22, %v171_v4 }
  0xab   :  { %204 = vst.msk [vmem:[%s442_s4 + $0x58] sm:$0xff] %vm192_vm1, %v187_v5 }
  0xac   :  { %208 = vst.msk [vmem:[%s442_s4 + $0x78] sm:$0xff] %vm192_vm1, %v191_v6 }

</bundles_post_ra>
